<compile_context>
chip_gen: v7x
topology: tpu7x:2x2x1
jax: 0.10.0
libtpu: 0.0.40
codegen_flags: <defaults>
</compile_context>

<pallas_src>
import jax
import jax.numpy as jnp
from jax.experimental import pallas as pl
from jax.experimental.pallas import tpu as pltpu


def se_kernel(x_ref, w1t_ref, b1_ref, w2t_ref, b2_ref, ws_ref, bs_ref, o_ref):
    # x_ref block: (B_blk, C, HW), x.dtype (f32 or bf16); weights are f32.
    hw = x_ref.shape[2]
    f32 = jnp.float32

    # ---- channel branch: global avg pool -> 1x1 conv -> ReLU -> 1x1 conv -> sigmoid
    pooled = jnp.sum(x_ref[...].astype(f32), axis=2) * (1.0 / hw)        # (Bb, C)  lane-dense
    h = jnp.dot(pooled, w1t_ref[...], preferred_element_type=f32) + b1_ref[...]   # (Bb, Cr)
    h = jnp.maximum(h, 0.0)                                              # ReLU
    c = jnp.dot(h, w2t_ref[...], preferred_element_type=f32) + b2_ref[...]         # (Bb, C)
    chan = jax.nn.sigmoid(c)                                             # (Bb, C)

    # ---- spatial branch: 1x1 conv (C -> 1) -> sigmoid
    # VPU multiply + sublane reduce (avoid a 1-row MXU matmul).
    s = jnp.sum(x_ref[...].astype(f32) * ws_ref[...][None], axis=1) + bs_ref[0, 0]  # (Bb, HW)
    spat = jax.nn.sigmoid(s)

    # ---- fused combine: x * (chan + spat)  (== x*chan + x*spat)
    o_ref[...] = (x_ref[...].astype(f32)
                  * (chan[:, :, None] + spat[:, None, :])).astype(o_ref.dtype)


def _default_target_block_bytes():
    # ~4 MiB blocks keep 4x (double-buffered in+out) + temporaries well under
    # v7x's 64 MiB VMEM; on 128-MiB parts (v5e/v6e) use 8 MiB blocks.
    try:
        info = pltpu.get_tpu_info()
        vmem = getattr(info, "vmem_capacity_bytes", 64 << 20)
    except Exception:
        vmem = 64 << 20
    return (8 << 20) if vmem >= (128 << 20) else (4 << 20)


def _choose_batch_block(B, C, HW, itemsize, target_bytes, min_steps=4):
    """Batch elements per grid step.

    Prefers multi-MiB x blocks (per-step overhead dominates tiny blocks), but
    also >= `min_steps` grid steps when B allows (v7x shards the parallel
    batch axis across 2 TensorCores; >= 2 steps/core keeps the DMA pipeline
    double-buffered) — never shrinking blocks below ~1/4 of the target.
    """
    per_b = max(1, C * HW * itemsize)
    b_blk = max(1, min(B, target_bytes // per_b))
    floor_blk = max(1, (target_bytes // 4) // per_b)
    for steps in (min_steps, 2):
        cand = pl.cdiv(B, steps)
        if cand >= floor_blk:
            b_blk = min(b_blk, cand)
            break
    return b_blk


def squeeze_excite(x, w1, b1, w2, b2, ws, bs, *,
                   target_block_bytes=None, batch_block=None):
    """x: [B, C, H, W] (f32 or bf16); 1x1-conv params (squeezed, f32):
    w1: (Cr, C), b1: (Cr, 1), w2: (C, Cr), b2: (C, 1), ws: (1, C), bs: (1, 1)
    """
    B, C, H, W = x.shape
    HW = H * W
    Cr = w1.shape[0]
    dtype = x.dtype
    itemsize = jnp.dtype(dtype).itemsize

    if target_block_bytes is None:
        target_block_bytes = _default_target_block_bytes()

    x_flat = x.reshape(B, C, HW)
    w1t = w1.T.astype(jnp.float32)          # (C, Cr)   pooled @ w1t
    w2t = w2.T.astype(jnp.float32)          # (Cr, C)   h @ w2t
    b1r = b1.reshape(1, Cr).astype(jnp.float32)   # lane-dense bias rows
    b2r = b2.reshape(1, C).astype(jnp.float32)
    ws_col = ws.reshape(C, 1).astype(jnp.float32)  # column, broadcast over (Bb, C, HW)
    bs2 = bs.reshape(1, 1).astype(jnp.float32)     # scalar in SMEM

    if batch_block is None:
        b_blk = _choose_batch_block(B, C, HW, itemsize, target_block_bytes)
    else:
        b_blk = max(1, min(B, int(batch_block)))
    # Rows are independent, so a partial tail block is safe: its garbage rows
    # are never written back.
    grid = (pl.cdiv(B, b_blk),)

    # TODO(synk): for very large per-batch slabs (C*H*W*itemsize of many MiB)
    # or B == 1 on v7x, add an inner HW grid axis (pool-accumulate pass, then
    # spatial+combine pass) so blocks fit 64 MiB VMEM; currently the full H*W
    # extent is kept per block.

    block_bytes = b_blk * C * HW * itemsize
    # 4x block for double-buffered in+out, ~2x block for block-sized
    # elementwise temporaries, plus weights / compiler scratch slack.
    vmem_limit = 6 * block_bytes + (6 << 20)
    vmem_limit = int(max(16 << 20, min(vmem_limit, 64 << 20)))

    def full(shape):
        return pl.BlockSpec(shape, lambda b: (0,) * len(shape))

    out = pl.pallas_call(
        se_kernel,
        out_shape=jax.ShapeDtypeStruct((B, C, HW), dtype),
        grid_spec=pltpu.PrefetchScalarGridSpec(
            num_scalar_prefetch=0,
            grid=grid,
            in_specs=[
                pl.BlockSpec((b_blk, C, HW), lambda b: (b, 0, 0)),   # x
                full((C, Cr)),                                       # w1.T
                full((1, Cr)),                                       # b1 row
                full((Cr, C)),                                       # w2.T
                full((1, C)),                                        # b2 row
                full((C, 1)),                                        # ws column
                pl.BlockSpec(memory_space=pltpu.MemorySpace.SMEM),   # bs scalar
            ],
            out_specs=pl.BlockSpec((b_blk, C, HW), lambda b: (b, 0, 0)),
        ),
        compiler_params=pltpu.CompilerParams(
            dimension_semantics=("parallel",),
            vmem_limit_bytes=vmem_limit,
        ),
    )(x_flat, w1t, b1r, w2t, b2r, ws_col, bs2)
    return out.reshape(B, C, H, W)


def reference(x, w1, b1, w2, b2, ws, bs):
    xf = x.astype(jnp.float32)
    pooled = jnp.mean(xf, axis=(2, 3))                      # (B, C)
    h = jnp.maximum(pooled @ w1.T + b1[:, 0], 0.0)          # (B, Cr)
    chan = jax.nn.sigmoid(h @ w2.T + b2[:, 0])              # (B, C)
    spat = jax.nn.sigmoid(
        jnp.einsum("oc,bchw->bohw", ws, xf) + bs[0, 0])     # (B, 1, H, W)
    return (xf * chan[:, :, None, None] + xf * spat).astype(x.dtype)


if __name__ == "__main__":
    key = jax.random.PRNGKey(0)

    C, red = 32, 16                       # in_channel=32, reduction=16 -> Cr=2
    Cr = C // red

    kp, kx1, kx2, kx3 = jax.random.split(key, 4)
    kw = jax.random.split(kp, 6)
    w1 = jax.random.normal(kw[0], (Cr, C), jnp.float32) * 0.1
    b1 = jax.random.normal(kw[1], (Cr, 1), jnp.float32) * 0.1
    w2 = jax.random.normal(kw[2], (C, Cr), jnp.float32) * 0.1
    b2 = jax.random.normal(kw[3], (C, 1), jnp.float32) * 0.1
    ws = jax.random.normal(kw[4], (1, C), jnp.float32) * 0.1
    bs = jax.random.normal(kw[5], (1, 1), jnp.float32) * 0.1
    params = (w1, b1, w2, b2, ws, bs)

    # 1) aligned shapes (C % 8 == 0, HW % 128 == 0), f32
    x1 = jax.random.normal(kx1, (4, C, 16, 16), jnp.float32)
    out1 = jax.block_until_ready(squeeze_excite(x1, *params))
    ref1 = reference(x1, *params)
    assert out1.shape == ref1.shape == x1.shape
    assert jnp.allclose(out1, ref1, atol=2e-5, rtol=2e-5), (
        float(jnp.max(jnp.abs(out1 - ref1))))

    # 2) awkward shapes: 7x7 spatial (HW=49), B=3 with a forced partial tail block
    x2 = jax.random.normal(kx2, (3, C, 7, 7), jnp.float32)
    out2 = jax.block_until_ready(squeeze_excite(x2, *params, batch_block=2))
    ref2 = reference(x2, *params)
    assert jnp.allclose(out2, ref2, atol=2e-5, rtol=2e-5), (
        float(jnp.max(jnp.abs(out2 - ref2))))

    # 3) bf16 activations streamed (compute stays f32)
    x3 = jax.random.normal(kx3, (2, C, 16, 16), jnp.float32).astype(jnp.bfloat16)
    out3 = jax.block_until_ready(squeeze_excite(x3, *params))
    ref3 = reference(x3, *params)
    assert out3.dtype == jnp.bfloat16
    assert jnp.allclose(out3.astype(jnp.float32), ref3.astype(jnp.float32),
                        atol=5e-2, rtol=5e-2), (
        float(jnp.max(jnp.abs(out3.astype(jnp.float32) - ref3.astype(jnp.float32)))))

    print("KERNEL_OK")
</pallas_src>

<mosaic_0001>
module attributes {stable_mosaic.version = 11 : i64} {
  func.func @se_kernel(%arg0: i32, %arg1: memref<4x32x256xf32, #tpu.memory_space<vmem>>, %arg2: memref<32x2xf32, #tpu.memory_space<vmem>>, %arg3: memref<1x2xf32, #tpu.memory_space<vmem>>, %arg4: memref<2x32xf32, #tpu.memory_space<vmem>>, %arg5: memref<1x32xf32, #tpu.memory_space<vmem>>, %arg6: memref<32x1xf32, #tpu.memory_space<vmem>>, %arg7: memref<1x1xf32, #tpu.memory_space<smem>>, %arg8: memref<4x32x256xf32, #tpu.memory_space<vmem>>) attributes {dimension_semantics = [#tpu.dimension_semantics<parallel>], iteration_bounds = array<i64: 1>, scalar_prefetch = 0 : i64, scratch_operands = 0 : i64, tpu.core_type = #tpu.core_type<tc>, window_params = [{transform_indices = @transform_0, window_bounds = array<i64: 4, 32, 256>}, {pipeline_mode = #tpu.pipeline_mode<synchronous>, transform_indices = @transform_1, window_bounds = array<i64: 32, 2>}, {pipeline_mode = #tpu.pipeline_mode<synchronous>, transform_indices = @transform_2, window_bounds = array<i64: 1, 2>}, {pipeline_mode = #tpu.pipeline_mode<synchronous>, transform_indices = @transform_3, window_bounds = array<i64: 2, 32>}, {pipeline_mode = #tpu.pipeline_mode<synchronous>, transform_indices = @transform_4, window_bounds = array<i64: 1, 32>}, {pipeline_mode = #tpu.pipeline_mode<synchronous>, transform_indices = @transform_5, window_bounds = array<i64: 32, 1>}, {transform_indices = @transform_6, window_bounds = array<i64: 1, 1>}, {transform_indices = @transform_7, window_bounds = array<i64: 4, 32, 256>}]} {
    %c0 = arith.constant 0 : index
    %c0_0 = arith.constant 0 : index
    %c0_1 = arith.constant 0 : index
    %0 = vector.load %arg1[%c0, %c0_0, %c0_1] : memref<4x32x256xf32, #tpu.memory_space<vmem>>, vector<4x32x256xf32>
    %cst = arith.constant dense<0.000000e+00> : vector<4x32xf32>
    %1 = vector.multi_reduction <add>, %0, %cst [2] : vector<4x32x256xf32> to vector<4x32xf32>
    %cst_2 = arith.constant 3.906250e-03 : f32
    %2 = vector.broadcast %cst_2 : f32 to vector<4x32xf32>
    %3 = arith.mulf %1, %2 : vector<4x32xf32>
    %c0_3 = arith.constant 0 : index
    %c0_4 = arith.constant 0 : index
    %4 = vector.load %arg2[%c0_3, %c0_4] : memref<32x2xf32, #tpu.memory_space<vmem>>, vector<32x2xf32>
    %cst_5 = arith.constant dense<0.000000e+00> : vector<4x2xf32>
    %5 = tpu.matmul %3, %4, %cst_5 {dimension_numbers = #tpu.dot_dimension_numbers<[1], [0], [0], [1], [0, 0, 1, 1], [], []>} : vector<4x32xf32>, vector<32x2xf32>, vector<4x2xf32> -> vector<4x2xf32>
    %c0_6 = arith.constant 0 : index
    %c0_7 = arith.constant 0 : index
    %6 = vector.load %arg3[%c0_6, %c0_7] : memref<1x2xf32, #tpu.memory_space<vmem>>, vector<1x2xf32>
    %7 = vector.broadcast %6 : vector<1x2xf32> to vector<4x2xf32>
    %8 = arith.addf %5, %7 : vector<4x2xf32>
    %cst_8 = arith.constant 0.000000e+00 : f32
    %9 = vector.broadcast %cst_8 : f32 to vector<4x2xf32>
    %10 = arith.maximumf %8, %9 : vector<4x2xf32>
    %c0_9 = arith.constant 0 : index
    %c0_10 = arith.constant 0 : index
    %11 = vector.load %arg4[%c0_9, %c0_10] : memref<2x32xf32, #tpu.memory_space<vmem>>, vector<2x32xf32>
    %cst_11 = arith.constant dense<0.000000e+00> : vector<4x32xf32>
    %12 = tpu.matmul %10, %11, %cst_11 {dimension_numbers = #tpu.dot_dimension_numbers<[1], [0], [0], [1], [0, 0, 1, 1], [], []>} : vector<4x2xf32>, vector<2x32xf32>, vector<4x32xf32> -> vector<4x32xf32>
    %c0_12 = arith.constant 0 : index
    %c0_13 = arith.constant 0 : index
    %13 = vector.load %arg5[%c0_12, %c0_13] : memref<1x32xf32, #tpu.memory_space<vmem>>, vector<1x32xf32>
    %14 = vector.broadcast %13 : vector<1x32xf32> to vector<4x32xf32>
    %15 = arith.addf %12, %14 : vector<4x32xf32>
    %16 = arith.negf %15 : vector<4x32xf32>
    %17 = math.exp %16 : vector<4x32xf32>
    %cst_14 = arith.constant 1.000000e+00 : f32
    %18 = vector.broadcast %cst_14 : f32 to vector<4x32xf32>
    %19 = arith.addf %18, %17 : vector<4x32xf32>
    %20 = arith.divf %18, %19 : vector<4x32xf32>
    %c0_15 = arith.constant 0 : index
    %c0_16 = arith.constant 0 : index
    %c0_17 = arith.constant 0 : index
    %21 = vector.load %arg1[%c0_15, %c0_16, %c0_17] : memref<4x32x256xf32, #tpu.memory_space<vmem>>, vector<4x32x256xf32>
    %c0_18 = arith.constant 0 : index
    %c0_19 = arith.constant 0 : index
    %22 = vector.load %arg6[%c0_18, %c0_19] : memref<32x1xf32, #tpu.memory_space<vmem>>, vector<32x1xf32>
    %23 = vector.shape_cast %22 : vector<32x1xf32> to vector<1x32x1xf32>
    %24 = vector.broadcast %23 : vector<1x32x1xf32> to vector<4x32x256xf32>
    %25 = arith.mulf %21, %24 : vector<4x32x256xf32>
    %cst_20 = arith.constant dense<0.000000e+00> : vector<4x256xf32>
    %26 = vector.multi_reduction <add>, %25, %cst_20 [1] : vector<4x32x256xf32> to vector<4x256xf32>
    %c0_21 = arith.constant 0 : index
    %c0_22 = arith.constant 0 : index
    %27 = memref.load %arg7[%c0_21, %c0_22] : memref<1x1xf32, #tpu.memory_space<smem>>
    %28 = vector.broadcast %27 : f32 to vector<4x256xf32>
    %29 = arith.addf %26, %28 : vector<4x256xf32>
    %30 = arith.negf %29 : vector<4x256xf32>
    %31 = math.exp %30 : vector<4x256xf32>
    %cst_23 = arith.constant 1.000000e+00 : f32
    %32 = vector.broadcast %cst_23 : f32 to vector<4x256xf32>
    %33 = arith.addf %32, %31 : vector<4x256xf32>
    %34 = arith.divf %32, %33 : vector<4x256xf32>
    %c0_24 = arith.constant 0 : index
    %c0_25 = arith.constant 0 : index
    %c0_26 = arith.constant 0 : index
    %35 = vector.load %arg1[%c0_24, %c0_25, %c0_26] : memref<4x32x256xf32, #tpu.memory_space<vmem>>, vector<4x32x256xf32>
    %36 = vector.shape_cast %20 : vector<4x32xf32> to vector<4x32x1xf32>
    %37 = vector.shape_cast %34 : vector<4x256xf32> to vector<4x1x256xf32>
    %38 = vector.broadcast %36 : vector<4x32x1xf32> to vector<4x32x256xf32>
    %39 = vector.broadcast %37 : vector<4x1x256xf32> to vector<4x32x256xf32>
    %40 = arith.addf %38, %39 : vector<4x32x256xf32>
    %41 = arith.mulf %35, %40 : vector<4x32x256xf32>
    %c0_27 = arith.constant 0 : index
    %c0_28 = arith.constant 0 : index
    %c0_29 = arith.constant 0 : index
    %42 = vector.load %arg8[%c0_27, %c0_28, %c0_29] : memref<4x32x256xf32, #tpu.memory_space<vmem>>, vector<4x32x256xf32>
    tpu.vector_store %arg8[%c0_27, %c0_28, %c0_29], %41 {strides = array<i32>} : memref<4x32x256xf32, #tpu.memory_space<vmem>>, vector<4x32x256xf32>,
    return
  }
  func.func @transform_0(%arg0: i32) -> (i32, i32, i32) {
    %c0_i32 = arith.constant 0 : i32
    %c0_i32_0 = arith.constant 0 : i32
    %c0_i32_1 = arith.constant 0 : i32
    return %arg0, %c0_i32, %c0_i32_0 : i32, i32, i32
  }
  func.func @transform_1(%arg0: i32) -> (i32, i32) {
    %c0_i32 = arith.constant 0 : i32
    %c0_i32_0 = arith.constant 0 : i32
    %c0_i32_1 = arith.constant 0 : i32
    return %c0_i32, %c0_i32_0 : i32, i32
  }
  func.func @transform_2(%arg0: i32) -> (i32, i32) {
    %c0_i32 = arith.constant 0 : i32
    %c0_i32_0 = arith.constant 0 : i32
    %c0_i32_1 = arith.constant 0 : i32
    return %c0_i32, %c0_i32_0 : i32, i32
  }
  func.func @transform_3(%arg0: i32) -> (i32, i32) {
    %c0_i32 = arith.constant 0 : i32
    %c0_i32_0 = arith.constant 0 : i32
    %c0_i32_1 = arith.constant 0 : i32
    return %c0_i32, %c0_i32_0 : i32, i32
  }
  func.func @transform_4(%arg0: i32) -> (i32, i32) {
    %c0_i32 = arith.constant 0 : i32
    %c0_i32_0 = arith.constant 0 : i32
    %c0_i32_1 = arith.constant 0 : i32
    return %c0_i32, %c0_i32_0 : i32, i32
  }
  func.func @transform_5(%arg0: i32) -> (i32, i32) {
    %c0_i32 = arith.constant 0 : i32
    %c0_i32_0 = arith.constant 0 : i32
    %c0_i32_1 = arith.constant 0 : i32
    return %c0_i32, %c0_i32_0 : i32, i32
  }
  func.func @transform_6(%arg0: i32) -> (i32, i32) {
    %c0_i32 = arith.constant 0 : i32
    %c0_i32_0 = arith.constant 0 : i32
    %c0_i32_1 = arith.constant 0 : i32
    return %c0_i32, %c0_i32_0 : i32, i32
  }
  func.func @transform_7(%arg0: i32) -> (i32, i32, i32) {
    %c0_i32 = arith.constant 0 : i32
    %c0_i32_0 = arith.constant 0 : i32
    %c0_i32_1 = arith.constant 0 : i32
    return %arg0, %c0_i32, %c0_i32_0 : i32, i32, i32
  }
}

</mosaic_0001>

<bundles_post_ra>
// kernel: tpu_custom_call.1
= control target key start
LH: loop header
LB: loop body
LE: loop exit
PB: predicated region body
PF: predicated region fallthrough
CT: control target
= control target key end

     0   :  { %13 = vsyncpa [#allocation4], 0  ;;  %s1260_s0 = inlined_call_operand.hbm [shape: f32[4,32,256], index: 0, kind: input, shape index: {}]   ;;  %s1261_s1 = inlined_call_operand.vmem [shape: f32[32,2], index: 1, kind: input, shape index: {}]   ;;  %s1262_s2 = inlined_call_operand.vmem [shape: f32[1,2], index: 2, kind: input, shape index: {}]   ;;  %s1263_s3 = inlined_call_operand.vmem [shape: f32[2,32], index: 3, kind: input, shape index: {}]   ;;  %s1264_s4 = inlined_call_operand.vmem [shape: f32[1,32], index: 4, kind: input, shape index: {}]   ;;  %s1265_s5 = inlined_call_operand.vmem [shape: f32[32,1], index: 5, kind: input, shape index: {}]   ;;  %s1266_s6 = inlined_call_operand.<no memory space> [shape: f32[1,1], index: 6, kind: input, shape index: {}]   ;;  %s1267_s7 = inlined_call_operand.hbm [shape: f32[4,32,256], index: 7, kind: output, shape index: {}]  }
   0x1   :  { %14 = vsyncpa [#allocation5], 0  ;;  %s933_s24 = smov [#allocation3]   ;;  %s885_s28 = scalar_lea.hbm %s1260_s0, 4096 }
   0x2   :  { %s20_s25 = sshll.u32 %s933_s24, 4  ;;  %p886_p0 = scmp.ne.s32.totalorder %s1260_s0, %s885_s28  ;;  %s21_s25 = int_to_ptr.vmem [resolvable:$true] %s20_s25 }
   0x3   :  { %p889_p1 = scmp.lt.u32.totalorder %s885_s28, %s1260_s0 }
   0x5   :  { %p891_p2 = pnand %p889_p1, %p886_p0 }
   0x7   :  { %894 = shalt.err (!%p891_p2)
}
   0x8   :  { %s895_s10 = scalar_lea.vmem %s21_s25, 4096  ;;  %p900_p4 = scmp.lt.s32.totalorder %s21_s25, %s21_s25 }
   0x9   :  { %p896_p3 = scmp.ne.s32.totalorder %s21_s25, %s895_s10  ;;  %p901_p5 = scmp.lt.s32.totalorder %s895_s10, %s895_s10 }
   0xb   :  { %p902_p6 = por %p901_p5, %p900_p4 }
   0xd   :  { %p903_p7 = pnand %p902_p6, %p896_p3 }
   0xf   :  { %906 = shalt.err (!%p903_p7)
}
  0x10   :  { %s934_s11 = smov 256   ;;  %s935_s12 = smov 16  }
  0x11   :  { %26 = dma.hbm_to_vmem [thread:$0]  %s1260_s0, 4096, %s21_s25, [#allocation4], %s934_s11, %s934_s11, %s935_s12  }
  0x12   :  { %929 = dma.done.wait [#allocation4], 4096  }
  0x13   :  { %930 = vsyncadd [#allocation4], 4294963200  ;;  %v996_v0 = vld [vmem:[#allocation3 + $0x40] sm:$0xff]  ;;  %v998_v1 = vld [vmem:[#allocation3 + $0x48] sm:$0xff]  ;;  %v936_v51 = vmov 0.0|0.0   ;;  %vm937_vm0 = vmmov 0   ;;  %v165_v62 = vlaneseq }
  0x14   :  { %v1000_v2 = vld [vmem:[#allocation3] sm:$0xff]  ;;  %v86_v3 = vadd.f32 %v998_v1, %v996_v0  ;;  %v1004_v4 = vld [vmem:[#allocation3 + $0x8] sm:$0xff]  ;;  %v1006_v5 = vld [vmem:[#allocation3 + $0x50] sm:$0xff]  ;;  %833 = vmatprep.subr.bf16.mxu0 %v936_v51  ;;  %v938_v55 = vmov 0.0   ;;  %vm176_vm1 = vcmask 130112   ;;  %vm183_vm2 = vcmask 195712  }
  0x15   :  { %v1008_v6 = vld [vmem:[#allocation3 + $0x58] sm:$0xff]  ;;  %v74_v7 = vadd.f32 %v1004_v4, %v1000_v2  ;;  %v1012_v8 = vld [vmem:[#allocation3 + $0x10] sm:$0xff]  ;;  %v1020_v12 = vld [vmem:[#allocation3 + $0x60] sm:$0xff]  ;;  %825 = vmatprep.mubr.msk.f32.mxu0 %vm937_vm0, %v938_v55  ;;  %828 = vmatprep.subr.mxu1 %v938_v55  ;;  %vm190_vm3 = vcmask 261312   ;;  %vm249_vm4 = vcmask 1041409   ;;  %vm251_vm5 = vcmask 1042434  }
  0x16   :  { %v1014_v9 = vld [vmem:[#allocation3 + $0x18] sm:$0xff]  ;;  %87 = vadd.xlane.f32.xlu1 %v86_v3  ;;  %v89_v10 = vadd.f32 %v1008_v6, %v1006_v5  ;;  %v1022_v13 = vld [vmem:[#allocation3 + $0x68] sm:$0xff]  ;;  %v1024_v14 = vld [vmem:[#allocation3 + $0x20] sm:$0xff]  ;;  %830 = vmatprep.mubr.msk.f32.mxu1 %vm937_vm0, %v938_v55  ;;  %vm253_vm6 = vcmask 1043459   ;;  %vm255_vm7 = vcmask 261120   ;;  %vm341_vm8 = vcmask 1041408  }
  0x17   :  { %75 = vadd.xlane.f32.xlu0 %v74_v7  ;;  %v77_v11 = vadd.f32 %v1014_v9, %v1012_v8  ;;  %v1026_v15 = vld [vmem:[#allocation3 + $0x28] sm:$0xff]  ;;  %v92_v16 = vadd.f32 %v1022_v13, %v1020_v12  ;;  %v1032_v18 = vld [vmem:[#allocation3 + $0x90] sm:$0xff]  ;;  %v1034_v19 = vld [vmem:[#allocation3 + $0x98] sm:$0xff]  ;;  %v166_v7 = vand.u32 127, %v165_v62  ;;  %vm337_vm9 = vcmask 15360  }
  0x18   :  { %v80_v17 = vadd.f32 %v1026_v15, %v1024_v14  ;;  %v1036_v20 = vld [vmem:[#allocation3 + $0x80] sm:$0xff]  ;;  %v1038_v21 = vld [vmem:[#allocation3 + $0x88] sm:$0xff]  ;;  %v101_v22 = vadd.f32 %v1034_v19, %v1032_v18  ;;  %v1044_v24 = vld [vmem:[#allocation3 + $0x70] sm:$0xff] }
  0x19   :  { %v98_v23 = vadd.f32 %v1038_v21, %v1036_v20  ;;  %v1046_v25 = vld [vmem:[#allocation3 + $0x78] sm:$0xff]  ;;  %v1048_v26 = vld [vmem:[#allocation3 + $0x30] sm:$0xff]  ;;  %v1056_v30 = vld [vmem:[#allocation3 + $0xc0] sm:$0xff] }
  0x1a   :  { %90 = vadd.xlane.f32.xlu1 %v89_v10  ;;  %v1050_v27 = vld [vmem:[#allocation3 + $0x38] sm:$0xff]  ;;  %v95_v28 = vadd.f32 %v1046_v25, %v1044_v24  ;;  %1278 = vst [vmem:[#allocation9_spill] sm:$0xff] %v1056_v30  ;;  %v1058_v31 = vld [vmem:[#allocation3 + $0xc8] sm:$0xff]  ;;  %v1060_v32 = vld [vmem:[#allocation3 + $0xa0] sm:$0xff]  ;;  %v1104_v10 = vshrl.u32 %v165_v62, 7 }
  0x1b   :  { %78 = vadd.xlane.f32.xlu0 %v77_v11  ;;  %v83_v29 = vadd.f32 %v1050_v27, %v1048_v26  ;;  %1279 = vst [vmem:[#allocation10_spill] sm:$0xff] %v1058_v31  ;;  %v1062_v33 = vld [vmem:[#allocation3 + $0xa8] sm:$0xff]  ;;  %v110_v34 = vadd.f32 %v1058_v31, %v1056_v30  ;;  %v1068_v36 = vld [vmem:[#allocation3 + $0xb0] sm:$0xff]  ;;  %v1070_v37 = vld [vmem:[#allocation3 + $0xb8] sm:$0xff]  ;;  %v171_v11 = vadd.s32 4294967288, %v166_v7 }
  0x1c   :  { %1280 = vst [vmem:[#allocation11_spill] sm:$0xff] %v1062_v33  ;;  %v104_v35 = vadd.f32 %v1062_v33, %v1060_v32  ;;  %v1072_v38 = vld [vmem:[#allocation3 + $0xd0] sm:$0xff]  ;;  %v1074_v39 = vld [vmem:[#allocation3 + $0xd8] sm:$0xff]  ;;  %v107_v40 = vadd.f32 %v1070_v37, %v1068_v36  ;;  %v1084_v44 = vld [vmem:[#allocation3 + $0xe0] sm:$0xff] }
  0x1d   :  { %v113_v41 = vadd.f32 %v1074_v39, %v1072_v38  ;;  %v1080_v42 = vld [vmem:[#allocation3 + $0xf0] sm:$0xff]  ;;  %v1082_v43 = vld [vmem:[#allocation3 + $0xf8] sm:$0xff]  ;;  %1283 = vst [vmem:[#allocation14_spill] sm:$0xff] %v1084_v44  ;;  %v1086_v45 = vld [vmem:[#allocation3 + $0xe8] sm:$0xff] }
  0x1e   :  { %93 = vadd.xlane.f32.xlu1 %v92_v16  ;;  %1281 = vst [vmem:[#allocation12_spill] sm:$0xff] %v1080_v42  ;;  %1282 = vst [vmem:[#allocation13_spill] sm:$0xff] %v1082_v43  ;;  %v119_v46 = vadd.f32 %v1082_v43, %v1080_v42  ;;  %v116_v47 = vadd.f32 %v1086_v45, %v1084_v44  ;;  %v138_v48 = vld [vmem:[%s1261_s1] sm:$0xff]  ;;  %v139_v49 = vld [vmem:[%s1261_s1 + $0x8] sm:$0xff] }
  0x1f   :  { %81 = vadd.xlane.f32.xlu0 %v80_v17  ;;  %1284 = vst [vmem:[#allocation15_spill] sm:$0xff] %v1086_v45  ;;  %v834_v50 = vpack.c.bf16 %v139_v49, %v138_v48  ;;  %v140_v52 = vld [vmem:[%s1261_s1 + $0x10] sm:$0xff]  ;;  %v141_v53 = vld [vmem:[%s1261_s1 + $0x18] sm:$0xff]  ;;  %v178_v17 = vadd.s32 4294967280, %v166_v7 }
  0x20   :  { %v837_v54 = vpack.c.bf16 %v141_v53, %v140_v52 }
  0x21   :  { %835 = vmatpush3.bf16.msra.mxu0 %v834_v50 }
  0x22   :  { %102 = vadd.xlane.f32.xlu1 %v101_v22  ;;  %836 = vmatprep.subr.bf16.mxu0 %v936_v51 }
  0x23   :  { %99 = vadd.xlane.f32.xlu0 %v98_v23  ;;  %v185_v23 = vadd.s32 4294967272, %v166_v7 }
  0x25   :  { %838 = vmatpush3.bf16.msra.mxu0 %v837_v54  ;;  %v188_v52 = vsub.s32 %v185_v23, %v1104_v10 }
  0x26   :  { %96 = vadd.xlane.f32.xlu1 %v95_v28  ;;  %v169_v28 = vsub.s32 %v166_v7, %v1104_v10 }
  0x27   :  { %84 = vadd.xlane.f32.xlu0 %v83_v29 }
  0x2a   :  { %111 = vadd.xlane.f32.xlu1 %v110_v34  ;;  %v174_v34 = vsub.s32 %v171_v11, %v1104_v10 }
  0x2b   :  { %105 = vadd.xlane.f32.xlu0 %v104_v35 }
  0x2e   :  { %108 = vadd.xlane.f32.xlu1 %v107_v40 }
  0x2f   :  { %114 = vadd.xlane.f32.xlu0 %v113_v41 }
  0x32   :  { %120 = vadd.xlane.f32.xlu1 %v119_v46  ;;  %v181_v46 = vsub.s32 %v178_v17, %v1104_v10 }
  0x33   :  { %117 = vadd.xlane.f32.xlu0 %v116_v47 }
  0xa3   :  { %v88_v56 = vpop.xlane.xlu1 %87 }
  0xa4   :  { %v76_v57 = vpop.xlane.xlu0 %75  ;;  %v126_v29 = vmul.f32 0.00390625, %v88_v56 }
  0xa5   :  { %v122_v54 = vmul.f32 0.00390625, %v76_v57 }
  0xa6   :  { %v195_v56 = vrot.slane %v126_v29, %v169_v28 }
  0xa7   :  { %v91_v58 = vpop.xlane.xlu1 %90  ;;  %v170_v23 = vrot.slane %v122_v54, %v169_v28 }
  0xa8   :  { %v79_v59 = vpop.xlane.xlu0 %78  ;;  %v127_v35 = vmul.f32 0.00390625, %v91_v58 }
  0xa9   :  { %v123_v41 = vmul.f32 0.00390625, %v79_v59 }
  0xaa   :  { %v199_v7 = vrot.slane %v127_v35, %v174_v34 }
  0xab   :  { %v94_v60 = vpop.xlane.xlu1 %93  ;;  %v175_v59 = vrot.slane %v123_v41, %v174_v34 }
  0xac   :  { %v82_v61 = vpop.xlane.xlu0 %81  ;;  %v128_v47 = vmul.f32 0.00390625, %v94_v60 }
  0xad   :  { %v124_v48 = vmul.f32 0.00390625, %v82_v61 }
  0xae   :  { %v204_v11 = vrot.slane %v128_v47, %v181_v46 }
  0xaf   :  { %v103_v63 = vpop.xlane.xlu1 %102  ;;  %v182_v17 = vrot.slane %v124_v48, %v181_v46 }
  0xb0   :  { %v100_v3 = vpop.xlane.xlu0 %99  ;;  %v131_v50 = vmul.f32 0.00390625, %v103_v63 }
  0xb1   :  { %v130_v51 = vmul.f32 0.00390625, %v100_v3 }
  0xb2   :  { %v218_v43 = vrot.slane %v131_v50, %v174_v34 }
  0xb3   :  { %v97_v16 = vpop.xlane.xlu1 %96  ;;  %v214_v63 = vrot.slane %v130_v51, %v169_v28 }
  0xb4   :  { %v85_v22 = vpop.xlane.xlu0 %84  ;;  %v129_v53 = vmul.f32 0.00390625, %v97_v16 }
  0xb5   :  { %v125_v55 = vmul.f32 0.00390625, %v85_v22  ;;  %v200_v22 = vsel %vm176_vm1, %v199_v7, %v195_v56  ;;  %v219_v51 = vsel %vm176_vm1, %v218_v43, %v214_v63  ;;  %v424_v63 = vld [vmem:[%s1265_s5 + $0x18] sm:$0xff] }
  0xb6   :  { %v209_v3 = vrot.slane %v129_v53, %v188_v52  ;;  %v205_v41 = vsel %vm183_vm2, %v204_v11, %v200_v22 }
  0xb7   :  { %v112_v40 = vpop.xlane.xlu1 %111  ;;  %v189_v16 = vrot.slane %v125_v55, %v188_v52 }
  0xb8   :  { %v106_v49 = vpop.xlane.xlu0 %105  ;;  %v134_v57 = vmul.f32 0.00390625, %v112_v40  ;;  %v210_v53 = vsel %vm190_vm3, %v209_v3, %v205_v41  ;;  %v796_v3 = vld [vmem:[%s1262_s2] ss:$0 sm:$0xff] }
  0xb9   :  { %v132_v62 = vmul.f32 0.00390625, %v106_v49  ;;  %v177_v49 = vsel %vm176_vm1, %v175_v59, %v170_v23 }
  0xba   :  { %v184_v50 = vsel %vm183_vm2, %v182_v17, %v177_v49  ;;  %v233_v55 = vrot.slane %v134_v57, %v169_v28  ;;  %v422_v28 = vld [vmem:[%s1265_s5 + $0x8] sm:$0xff] }
  0xbb   :  { %v109_v58 = vpop.xlane.xlu1 %108  ;;  %v223_v45 = vrot.slane %v132_v62, %v181_v46  ;;  %v191_v54 = vsel %vm190_vm3, %v189_v16, %v184_v50  ;;  %v628_v50 = vsub.s32 1, %v1104_v10 }
  0xbc   :  { %v133_v60 = vmul.f32 0.00390625, %v109_v58  ;;  %v115_v61 = vpop.xlane.xlu0 %114  ;;  %v250_v43 = vsel %vm249_vm4, %v210_v53, %v191_v54 }
  0xbd   :  { %v135_v42 = vmul.f32 0.00390625, %v115_v61  ;;  %v224_v62 = vsel %vm183_vm2, %v223_v45, %v219_v51  ;;  %v329_v45 = vld [vmem:[%s1263_s3] sm:$0x3]  ;;  %v423_v61 = vld [vmem:[%s1265_s5 + $0x10] sm:$0xff]  ;;  %v609_v51 = vsub.s32 0, %v1104_v10 }
  0xbe   :  { %v228_v29 = vrot.slane %v133_v60, %v188_v52  ;;  %829 = vmatpush3.msk.msra.mxu1 %vm341_vm8, %v329_v45 }
  0xbf   :  { %v121_v35 = vpop.xlane.xlu1 %120  ;;  %v237_v47 = vrot.slane %v135_v42, %v174_v34 }
  0xc0   :  { %v118_v48 = vpop.xlane.xlu0 %117  ;;  %v137_v58 = vmul.f32 0.00390625, %v121_v35  ;;  %v229_v7 = vsel %vm190_vm3, %v228_v29, %v224_v62  ;;  %v798_v29 = vld [vmem:[%s1264_s4] ss:$0 sm:$0xff] }
  0xc1   :  { %v136_v40 = vmul.f32 0.00390625, %v118_v48  ;;  %v238_v42 = vsel %vm176_vm1, %v237_v47, %v233_v55  ;;  %v252_v17 = vsel %vm251_vm5, %v229_v7, %v250_v43  ;;  %v647_v55 = vsub.s32 2, %v1104_v10 }
  0xc2   :  { %v247_v56 = vrot.slane %v137_v58, %v188_v52  ;;  %v939_v52 = vmov 0  }
  0xc3   :  { %v242_v59 = vrot.slane %v136_v40, %v181_v46  ;;  %v421_v46 = vld [vmem:[%s1265_s5] sm:$0xff]  ;;  %848 = vset.pattern.permute.xlu1 %v939_v52  ;;  %847 = vset.pattern.permute.xlu0 %v939_v52  ;;  %s940_s5 = smov [#allocation6]  }
  0xc4   :  { %432 = vperm.xlu1 %848, %v422_v28   ;;  %427 = vperm.xlu0 %847, %v421_v46  }
  0xc5   :  { %v243_v34 = vsel %vm183_vm2, %v242_v59, %v238_v42 }
  0xc6   :  { %v248_v11 = vsel %vm190_vm3, %v247_v56, %v243_v34  ;;  %v666_v56 = vsub.s32 3, %v1104_v10 }
  0xc7   :  { %v254_v60 = vsel %vm253_vm6, %v248_v11, %v252_v17 }
  0xc8   :  { %826 = vmatmul.mubr.msk.f32.vlgmr.msra.gmra.mrb[0].mxu0 %vm255_vm7, %v254_v60  ;;  %437 = vperm.xlu1 %848, %v423_v61  }
  0xcc   :  { %442 = vperm.xlu1 %848, %v424_v63  }
 0x143   :  { %v433_v59 = vpop.permute.xlu1 %432  ;;  %v428_v42 = vpop.permute.xlu0 %427 }
 0x144   :  { %v447_v43 = vmul.f32 %v433_v59, %v1012_v8  ;;  %v445_v11 = vmul.f32 %v428_v42, %v1000_v2  ;;  %v448_v17 = vmul.f32 %v433_v59, %v1014_v9  ;;  %v446_v10 = vmul.f32 %v428_v42, %v1004_v4 }
 0x145   :  { %v455_v60 = vmul.f32 %v433_v59, %v1006_v5  ;;  %v453_v45 = vmul.f32 %v428_v42, %v996_v0  ;;  %v456_v28 = vmul.f32 %v433_v59, %v1008_v6  ;;  %v454_v46 = vmul.f32 %v428_v42, %v998_v1 }
 0x146   :  { %v477_v61 = vadd.f32 %v447_v43, %v445_v11 }
 0x147   :  { %v438_v34 = vpop.permute.xlu1 %437 }
 0x148   :  { %v449_v52 = vmul.f32 %v438_v34, %v1024_v14  ;;  %v450_v63 = vmul.f32 %v438_v34, %v1026_v15  ;;  %v465_v43 = vmul.f32 %v438_v34, %v1060_v32 }
 0x19b   :  { %v324_v23 = vpop.f32.mrb[0].mxu0 }
 0x19c   :  { %v325_v16 = vadd.f32 %v796_v3, %v324_v23  ;;  %v827_v57 = vpop.f32.mrb[1].mxu0  ;;  %v486_v3 = vadd.f32 %v448_v17, %v446_v10  ;;  %v443_v23 = vpop.permute.xlu1 %442  ;;  %v466_v10 = vmul.f32 %v438_v34, %v1062_v33 }
 0x19d   :  { %v495_v57 = vadd.f32 %v455_v60, %v453_v45  ;;  %v469_v60 = vmul.f32 %v428_v42, %v1056_v30 }
 0x19e   :  { %v328_v22 = vmax.f32 %v325_v16, 0.0  ;;  %v457_v16 = vmul.f32 %v438_v34, %v1020_v12 }
 0x1a0   :  { %831 = vmatmul.mubr.msk.f32.vlgmr.msra.gmra.mrb[0].mxu1 %vm337_vm9, %v328_v22  ;;  %v458_v22 = vmul.f32 %v438_v34, %v1022_v13 }
 0x273   :  { %v411_v35 = vpop.f32.mrb[0].mxu1 }
 0x274   :  { %v412_v49 = vadd.f32 %v798_v29, %v411_v35  ;;  %v832_v41 = vpop.f32.mrb[1].mxu1  ;;  %v504_v29 = vadd.f32 %v456_v28, %v454_v46  ;;  %v451_v35 = vmul.f32 %v443_v23, %v1048_v26  ;;  %v472_v46 = vmul.f32 %v433_v59, %v1074_v39 }
 0x275   :  { %v452_v41 = vmul.f32 %v443_v23, %v1050_v27 }
 0x276   :  { %v801_v47 = vmul.f32 -1.442695, %v412_v49  ;;  %v478_v49 = vadd.f32 %v477_v61, %v449_v52  ;;  %v470_v52 = vmul.f32 %v428_v42, %v1058_v31  ;;  %v1287_v31 = vld [vmem:[#allocation13_spill] sm:$0xff] }
 0x277   :  { %v476_v30 = vmul.f32 %v443_v23, %v1287_v31 }
 0x278   :  { %849 = vpow2.f32 %v801_v47  ;;  %v487_v47 = vadd.f32 %v486_v3, %v450_v63  ;;  %v473_v3 = vmul.f32 %v438_v34, %v1084_v44 }
 0x282   :  { %v850_v48 = vpop.eup %849 }
 0x283   :  { %v418_v58 = vadd.f32 1.0, %v850_v48  ;;  %v463_v48 = vmul.f32 %v433_v59, %v1032_v18 }
 0x285   :  { %851 = vrcp.f32 %v418_v58  ;;  %v461_v58 = vmul.f32 %v428_v42, %v1036_v20 }
 0x287   :  { %v513_v11 = vadd.f32 %v463_v48, %v461_v58  ;;  %v540_v58 = vadd.f32 %v472_v46, %v470_v52 }
 0x28f   :  { %v852_v53 = vpop.eup %851 }
 0x290   :  { %v629_v40 = vrot.slane %v852_v53, %v628_v50  ;;  %v610_v54 = vrot.slane %v852_v53, %v609_v51  ;;  %v648_v62 = vrot.slane %v852_v53, %v647_v55  ;;  %v667_v7 = vrot.slane %v852_v53, %v666_v56 }
 0x291   :  { %v459_v50 = vmul.f32 %v443_v23, %v1044_v24  ;;  %v496_v51 = vadd.f32 %v495_v57, %v457_v16  ;;  %v464_v53 = vmul.f32 %v433_v59, %v1034_v19  ;;  %v505_v55 = vadd.f32 %v504_v29, %v458_v22 }
 0x292   :  { %635 = vbcast.lane.b32.xlu0 %v629_v40, 264  ;;  %612 = vbcast.lane.b32.xlu1 %v610_v54, 256  ;;  %v488_v56 = vadd.f32 %v487_v47, %v452_v41  ;;  %v467_v16 = vmul.f32 %v443_v23, %v1068_v36  ;;  %v514_v22 = vadd.f32 %v513_v11, %v465_v43  ;;  %v1285_v47 = vld [vmem:[#allocation15_spill] sm:$0xff] }
 0x293   :  { %v497_v17 = vadd.f32 %v496_v51, %v459_v50  ;;  %v474_v48 = vmul.f32 %v438_v34, %v1285_v47 }
 0x294   :  { %v489_v63 = vrot.slane %v488_v56, 4 }
 0x295   :  { %v498_v57 = vrot.slane %v497_v17, 4 }
 0x296   :  { %643 = vbcast.lane.b32.xlu0 %v629_v40, 280  ;;  %616 = vbcast.lane.b32.xlu1 %v610_v54, 264 }
 0x297   :  { %v499_v51 = vadd.f32 %v498_v57, %v497_v17 }
 0x29a   :  { %654 = vbcast.lane.b32.xlu0 %v648_v62, 264  ;;  %620 = vbcast.lane.b32.xlu1 %v610_v54, 272 }
 0x29e   :  { %662 = vbcast.lane.b32.xlu0 %v648_v62, 280  ;;  %624 = vbcast.lane.b32.xlu1 %v610_v54, 280  ;;  %v460_v54 = vmul.f32 %v443_v23, %v1046_v25 }
 0x2a0   :  { %v506_v28 = vadd.f32 %v505_v55, %v460_v54 }
 0x2a2   :  { %673 = vbcast.lane.b32.xlu0 %v667_v7, 264  ;;  %631 = vbcast.lane.b32.xlu1 %v629_v40, 256 }
 0x2a6   :  { %681 = vbcast.lane.b32.xlu0 %v667_v7, 280  ;;  %639 = vbcast.lane.b32.xlu1 %v629_v40, 272  ;;  %v462_v40 = vmul.f32 %v428_v42, %v1038_v21  ;;  %v515_v42 = vadd.f32 %v514_v22, %v467_v16 }
 0x2a8   :  { %v522_v45 = vadd.f32 %v464_v53, %v462_v40  ;;  %v1286_v53 = vld [vmem:[#allocation12_spill] sm:$0xff]  ;;  %v516_v33 = vrot.slane %v515_v42, 4 }
 0x2a9   :  { %v475_v40 = vmul.f32 %v443_v23, %v1286_v53 }
 0x2aa   :  { %650 = vbcast.lane.b32.xlu1 %v648_v62, 256  ;;  %v523_v41 = vadd.f32 %v522_v45, %v466_v10  ;;  %v517_v52 = vadd.f32 %v516_v33, %v515_v42 }
 0x2ac   :  { %v518_v22 = vrot.slane %v517_v52, 2 }
 0x2ae   :  { %658 = vbcast.lane.b32.xlu1 %v648_v62, 272  ;;  %v479_v62 = vadd.f32 %v478_v49, %v451_v35  ;;  %v468_v35 = vmul.f32 %v443_v23, %v1070_v37  ;;  %v507_v49 = vrot.slane %v506_v28, 4  ;;  %v519_v33 = vadd.f32 %v518_v22, %v517_v52 }
 0x2b0   :  { %v480_v61 = vrot.slane %v479_v62, 4  ;;  %v508_v54 = vadd.f32 %v507_v49, %v506_v28  ;;  %v524_v55 = vadd.f32 %v523_v41, %v468_v35 }
 0x2b2   :  { %669 = vbcast.lane.b32.xlu1 %v667_v7, 256  ;;  %v481_v50 = vadd.f32 %v480_v61, %v479_v62  ;;  %v509_v10 = vrot.slane %v508_v54, 2  ;;  %v525_v45 = vrot.slane %v524_v55, 4 }
 0x2b4   :  { %v482_v43 = vrot.slane %v481_v50, 2  ;;  %v510_v61 = vadd.f32 %v509_v10, %v508_v54 }
 0x2b6   :  { %677 = vbcast.lane.b32.xlu1 %v667_v7, 272  ;;  %v471_v7 = vmul.f32 %v433_v59, %v1072_v38  ;;  %v490_v59 = vadd.f32 %v489_v63, %v488_v56  ;;  %v483_v46 = vadd.f32 %v482_v43, %v481_v50  ;;  %v526_v63 = vadd.f32 %v525_v45, %v524_v55 }
 0x2b7   :  { %v520_v55 = vrot.slane %v519_v33, 1 }
 0x2b8   :  { %v531_v29 = vadd.f32 %v471_v7, %v469_v60  ;;  %v541_v7 = vadd.f32 %v540_v58, %v474_v48  ;;  %v491_v11 = vrot.slane %v490_v59, 2  ;;  %v500_v60 = vrot.slane %v499_v51, 2 }
 0x2b9   :  { %v484_v16 = vrot.slane %v483_v46, 1  ;;  %v527_v35 = vrot.slane %v526_v63, 2 }
 0x2ba   :  { %v532_v44 = vadd.f32 %v531_v29, %v473_v3  ;;  %v542_v62 = vadd.f32 %v541_v7, %v476_v30  ;;  %v492_v56 = vadd.f32 %v491_v11, %v490_v59  ;;  %v501_v17 = vadd.f32 %v500_v60, %v499_v51 }
 0x2bb   :  { %v511_v29 = vrot.slane %v510_v61, 1  ;;  %v485_v41 = vadd.f32 %v484_v16, %v483_v46  ;;  %v550_v30 = vstv %s1266_s6  ;;  %v528_v59 = vadd.f32 %v527_v35, %v526_v63  ;;  %s784_s6 = sshll.u32 %s940_s5, 4  ;;  %s785_s6 = int_to_ptr.vmem [resolvable:$true] %s784_s6 }
 0x2bc   :  { %v533_v34 = vadd.f32 %v532_v44, %v475_v40  ;;  %v543_v3 = vrot.slane %v542_v62, 4  ;;  %v493_v57 = vrot.slane %v492_v56, 1  ;;  %v502_v23 = vrot.slane %v501_v17, 1  ;;  %s907_s13 = scalar_lea.vmem %s785_s6, 4096  ;;  %p912_p9 = scmp.lt.s32.totalorder %s785_s6, %s785_s6 }
 0x2bd   :  { %v512_v50 = vadd.f32 %v511_v29, %v510_v61  ;;  %v551_v40 = vadd.f32 %v550_v30, %v485_v41  ;;  %v529_v7 = vrot.slane %v528_v59, 1  ;;  %v521_v46 = vadd.f32 %v520_v55, %v519_v33  ;;  %p908_p8 = scmp.ne.s32.totalorder %s785_s6, %s907_s13  ;;  %p913_p10 = scmp.lt.s32.totalorder %s907_s13, %s907_s13 }
 0x2be   :  { %v534_v28 = vrot.slane %v533_v34, 4  ;;  %v544_v48 = vadd.f32 %v543_v3, %v542_v62  ;;  %v494_v44 = vadd.f32 %v493_v57, %v492_v56  ;;  %v503_v58 = vadd.f32 %v502_v23, %v501_v17 }
 0x2bf   :  { %v554_v60 = vadd.f32 %v550_v30, %v512_v50  ;;  %v802_v45 = vmul.f32 -1.442695, %v551_v40  ;;  %v555_v61 = vadd.f32 %v550_v30, %v521_v46  ;;  %p914_p11 = por %p913_p10, %p912_p9 }
 0x2c0   :  { %v535_v49 = vadd.f32 %v534_v28, %v533_v34  ;;  %v545_v42 = vrot.slane %v544_v48, 2  ;;  %v552_v54 = vadd.f32 %v550_v30, %v494_v44  ;;  %v553_v43 = vadd.f32 %v550_v30, %v503_v58 }
 0x2c1   :  { %v530_v28 = vadd.f32 %v529_v7, %v528_v59  ;;  %v805_v17 = vmul.f32 -1.442695, %v554_v60  ;;  %853 = vpow2.f32 %v802_v45  ;;  %v806_v57 = vmul.f32 -1.442695, %v555_v61  ;;  %p915_p12 = pnand %p914_p11, %p908_p8 }
 0x2c2   :  { %v536_v51 = vrot.slane %v535_v49, 2  ;;  %v546_v10 = vadd.f32 %v545_v42, %v544_v48  ;;  %v803_v34 = vmul.f32 -1.442695, %v552_v54  ;;  %v804_v62 = vmul.f32 -1.442695, %v553_v43 }
 0x2c3   :  { %v556_v16 = vadd.f32 %v550_v30, %v530_v28 }
 0x2c4   :  { %v537_v11 = vadd.f32 %v536_v51, %v535_v49  ;;  %v547_v52 = vrot.slane %v546_v10, 1  ;;  %855 = vpow2.f32 %v803_v34 }
 0x2c5   :  { %857 = vpow2.f32 %v804_v62  ;;  %v807_v22 = vmul.f32 -1.442695, %v556_v16 }
 0x2c6   :  { %v538_v56 = vrot.slane %v537_v11, 1  ;;  %859 = vpow2.f32 %v805_v17  ;;  %v548_v3 = vadd.f32 %v547_v52, %v546_v10 }
 0x2c7   :  { %861 = vpow2.f32 %v806_v57 }
 0x2c8   :  { %v539_v63 = vadd.f32 %v538_v56, %v537_v11  ;;  %v558_v29 = vadd.f32 %v550_v30, %v548_v3  ;;  %863 = vpow2.f32 %v807_v22 }
 0x2ca   :  { %v557_v23 = vadd.f32 %v550_v30, %v539_v63  ;;  %v809_v44 = vmul.f32 -1.442695, %v558_v29 }
 0x2cb   :  { %v854_v35 = vpop.eup %853 }
 0x2cc   :  { %v808_v41 = vmul.f32 -1.442695, %v557_v23  ;;  %v583_v33 = vadd.f32 1.0, %v854_v35 }
 0x2ce   :  { %v856_v49 = vpop.eup %855  ;;  %865 = vpow2.f32 %v808_v41 }
 0x2cf   :  { %v858_v48 = vpop.eup %857  ;;  %v584_v50 = vadd.f32 1.0, %v856_v49  ;;  %867 = vpow2.f32 %v809_v44 }
 0x2d0   :  { %v860_v58 = vpop.eup %859  ;;  %v585_v59 = vadd.f32 1.0, %v858_v48  ;;  %869 = vrcp.f32 %v583_v33 }
 0x2d1   :  { %v586_v51 = vadd.f32 1.0, %v860_v58  ;;  %871 = vrcp.f32 %v584_v50  ;;  %v862_v42 = vpop.eup %861 }
 0x2d2   :  { %873 = vrcp.f32 %v585_v59  ;;  %v864_v30 = vpop.eup %863  ;;  %v587_v40 = vadd.f32 1.0, %v862_v42 }
 0x2d3   :  { %875 = vrcp.f32 %v586_v51  ;;  %v588_v54 = vadd.f32 1.0, %v864_v30 }
 0x2d4   :  { %877 = vrcp.f32 %v587_v40 }
 0x2d5   :  { %879 = vrcp.f32 %v588_v54 }
 0x2d8   :  { %v866_v55 = vpop.eup %865 }
 0x2d9   :  { %v868_v43 = vpop.eup %867  ;;  %v589_v45 = vadd.f32 1.0, %v866_v55 }
 0x2da   :  { %v870_v7 = vpop.eup %869  ;;  %v590_v34 = vadd.f32 1.0, %v868_v43 }
 0x2db   :  { %v872_v11 = vpop.eup %871  ;;  %881 = vrcp.f32 %v589_v45 }
 0x2dc   :  { %v1183_v60 = vpop.eup %873  ;;  %883 = vrcp.f32 %v590_v34 }
 0x2dd   :  { %v1185_v10 = vpop.eup %875 }
 0x2de   :  { %v1193_v22 = vpop.eup %877 }
 0x304   :  { %v613_v46 = vpop.permute.xlu1 %612  ;;  %v636_v62 = vpop.permute.xlu0 %635 }
 0x305   :  { %v683_v28 = vadd.f32 %v870_v7, %v613_v46  ;;  %v684_v56 = vadd.f32 %v872_v11, %v613_v46  ;;  %v693_v17 = vadd.f32 %v1183_v60, %v636_v62  ;;  %v694_v52 = vadd.f32 %v1185_v10, %v636_v62 }
 0x307   :  { %v715_v61 = vmul.f32 %v683_v28, %v1000_v2  ;;  %v716_v63 = vmul.f32 %v684_v56, %v1004_v4  ;;  %v725_v16 = vmul.f32 %v693_v17, %v1006_v5  ;;  %v726_v3 = vmul.f32 %v694_v52, %v1008_v6  ;;  %v1197_v4 = vpop.eup %879 }
 0x308   :  { %v617_v57 = vpop.permute.xlu1 %616  ;;  %v644_v23 = vpop.permute.xlu0 %643 }
 0x309   :  { %747 = vst [vmem:[#allocation6] sm:$0xff] %v715_v61  ;;  %748 = vst [vmem:[#allocation6 + $0x8] sm:$0xff] %v716_v63  ;;  %v685_v29 = vadd.f32 %v870_v7, %v617_v57  ;;  %v686_v35 = vadd.f32 %v872_v11, %v617_v57  ;;  %v697_v49 = vadd.f32 %v1183_v60, %v644_v23  ;;  %v1209_v42 = vpop.eup %881 }
 0x30a   :  { %757 = vst [vmem:[#allocation6 + $0x50] sm:$0xff] %v725_v16  ;;  %758 = vst [vmem:[#allocation6 + $0x58] sm:$0xff] %v726_v3  ;;  %v698_v2 = vadd.f32 %v1185_v10, %v644_v23  ;;  %v884_v45 = vpop.eup %883 }
 0x30b   :  { %v717_v5 = vmul.f32 %v685_v29, %v1012_v8  ;;  %v718_v6 = vmul.f32 %v686_v35, %v1014_v9  ;;  %v729_v41 = vmul.f32 %v697_v49, %v1044_v24  ;;  %v1288_v35 = vld [vmem:[#allocation11_spill] sm:$0xff] }
 0x30c   :  { %v730_v48 = vmul.f32 %v698_v2, %v1046_v25  ;;  %v621_v44 = vpop.permute.xlu1 %620  ;;  %v655_v58 = vpop.permute.xlu0 %654 }
 0x30d   :  { %749 = vst [vmem:[#allocation6 + $0x10] sm:$0xff] %v717_v5  ;;  %750 = vst [vmem:[#allocation6 + $0x18] sm:$0xff] %v718_v6  ;;  %v687_v33 = vadd.f32 %v870_v7, %v621_v44  ;;  %v688_v50 = vadd.f32 %v872_v11, %v621_v44  ;;  %v701_v59 = vadd.f32 %v1193_v22, %v655_v58 }
 0x30e   :  { %761 = vst [vmem:[#allocation6 + $0x70] sm:$0xff] %v729_v41  ;;  %762 = vst [vmem:[#allocation6 + $0x78] sm:$0xff] %v730_v48  ;;  %v702_v51 = vadd.f32 %v1197_v4, %v655_v58 }
 0x30f   :  { %v719_v8 = vmul.f32 %v687_v33, %v1024_v14  ;;  %v720_v9 = vmul.f32 %v688_v50, %v1026_v15  ;;  %v733_v24 = vmul.f32 %v701_v59, %v1032_v18 }
 0x310   :  { %v734_v25 = vmul.f32 %v702_v51, %v1034_v19  ;;  %v625_v30 = vpop.permute.xlu1 %624  ;;  %v663_v40 = vpop.permute.xlu0 %662 }
 0x311   :  { %751 = vst [vmem:[#allocation6 + $0x20] sm:$0xff] %v719_v8  ;;  %752 = vst [vmem:[#allocation6 + $0x28] sm:$0xff] %v720_v9  ;;  %v689_v54 = vadd.f32 %v870_v7, %v625_v30  ;;  %v690_v55 = vadd.f32 %v872_v11, %v625_v30  ;;  %v705_v43 = vadd.f32 %v1193_v22, %v663_v40 }
 0x312   :  { %765 = vst [vmem:[#allocation6 + $0x90] sm:$0xff] %v733_v24  ;;  %766 = vst [vmem:[#allocation6 + $0x98] sm:$0xff] %v734_v25  ;;  %v706_v14 = vadd.f32 %v1197_v4, %v663_v40 }
 0x313   :  { %v721_v15 = vmul.f32 %v689_v54, %v1048_v26  ;;  %v722_v18 = vmul.f32 %v690_v55, %v1050_v27  ;;  %v737_v19 = vmul.f32 %v705_v43, %v1068_v36 }
 0x314   :  { %v738_v34 = vmul.f32 %v706_v14, %v1070_v37  ;;  %v632_v46 = vpop.permute.xlu1 %631  ;;  %v674_v62 = vpop.permute.xlu0 %673 }
 0x315   :  { %753 = vst [vmem:[#allocation6 + $0x30] sm:$0xff] %v721_v15  ;;  %754 = vst [vmem:[#allocation6 + $0x38] sm:$0xff] %v722_v18  ;;  %v691_v7 = vadd.f32 %v1183_v60, %v632_v46  ;;  %v692_v11 = vadd.f32 %v1185_v10, %v632_v46  ;;  %v709_v28 = vadd.f32 %v1209_v42, %v674_v62 }
 0x316   :  { %769 = vst [vmem:[#allocation6 + $0xb0] sm:$0xff] %v737_v19  ;;  %770 = vst [vmem:[#allocation6 + $0xb8] sm:$0xff] %v738_v34  ;;  %v710_v56 = vadd.f32 %v884_v45, %v674_v62 }
 0x317   :  { %v723_v26 = vmul.f32 %v691_v7, %v996_v0  ;;  %v724_v27 = vmul.f32 %v692_v11, %v998_v1  ;;  %v741_v36 = vmul.f32 %v709_v28, %v1072_v38 }
 0x318   :  { %v742_v37 = vmul.f32 %v710_v56, %v1074_v39  ;;  %v640_v17 = vpop.permute.xlu1 %639  ;;  %v682_v52 = vpop.permute.xlu0 %681 }
 0x319   :  { %755 = vst [vmem:[#allocation6 + $0x40] sm:$0xff] %v723_v26  ;;  %756 = vst [vmem:[#allocation6 + $0x48] sm:$0xff] %v724_v27  ;;  %v695_v61 = vadd.f32 %v1183_v60, %v640_v17  ;;  %v696_v63 = vadd.f32 %v1185_v10, %v640_v17  ;;  %v713_v16 = vadd.f32 %v1209_v42, %v682_v52 }
 0x31a   :  { %773 = vst [vmem:[#allocation6 + $0xd0] sm:$0xff] %v741_v36  ;;  %774 = vst [vmem:[#allocation6 + $0xd8] sm:$0xff] %v742_v37  ;;  %v714_v3 = vadd.f32 %v884_v45, %v682_v52 }
 0x31b   :  { %v727_v0 = vmul.f32 %v695_v61, %v1020_v12  ;;  %v728_v1 = vmul.f32 %v696_v63, %v1022_v13  ;;  %v745_v38 = vmul.f32 %v713_v16, %v1286_v53 }
 0x31c   :  { %v746_v39 = vmul.f32 %v714_v3, %v1287_v31  ;;  %v651_v57 = vpop.permute.xlu1 %650 }
 0x31d   :  { %759 = vst [vmem:[#allocation6 + $0x60] sm:$0xff] %v727_v0  ;;  %760 = vst [vmem:[#allocation6 + $0x68] sm:$0xff] %v728_v1  ;;  %v699_v60 = vadd.f32 %v1193_v22, %v651_v57  ;;  %v700_v10 = vadd.f32 %v1197_v4, %v651_v57 }
 0x31e   :  { %777 = vst [vmem:[#allocation6 + $0xf0] sm:$0xff] %v745_v38  ;;  %778 = vst [vmem:[#allocation6 + $0xf8] sm:$0xff] %v746_v39 }
 0x31f   :  { %v731_v23 = vmul.f32 %v699_v60, %v1036_v20  ;;  %v732_v29 = vmul.f32 %v700_v10, %v1038_v21  ;;  %v1289_v20 = vld [vmem:[#allocation9_spill] sm:$0xff]  ;;  %v1290_v21 = vld [vmem:[#allocation10_spill] sm:$0xff] }
 0x320   :  { %v659_v12 = vpop.permute.xlu1 %658 }
 0x321   :  { %763 = vst [vmem:[#allocation6 + $0x80] sm:$0xff] %v731_v23  ;;  %764 = vst [vmem:[#allocation6 + $0x88] sm:$0xff] %v732_v29  ;;  %v703_v13 = vadd.f32 %v1193_v22, %v659_v12  ;;  %v704_v31 = vadd.f32 %v1197_v4, %v659_v12  ;;  %v1291_v4 = vld [vmem:[#allocation14_spill] sm:$0xff] }
 0x323   :  { %v735_v53 = vmul.f32 %v703_v13, %v1060_v32  ;;  %v736_v49 = vmul.f32 %v704_v31, %v1288_v35 }
 0x324   :  { %v670_v2 = vpop.permute.xlu1 %669 }
 0x325   :  { %767 = vst [vmem:[#allocation6 + $0xa0] sm:$0xff] %v735_v53  ;;  %768 = vst [vmem:[#allocation6 + $0xa8] sm:$0xff] %v736_v49  ;;  %v707_v5 = vadd.f32 %v1209_v42, %v670_v2  ;;  %v708_v6 = vadd.f32 %v884_v45, %v670_v2 }
 0x327   :  { %v739_v41 = vmul.f32 %v707_v5, %v1289_v20  ;;  %v740_v48 = vmul.f32 %v708_v6, %v1290_v21 }
 0x328   :  { %v678_v44 = vpop.permute.xlu1 %677 }
 0x329   :  { %771 = vst [vmem:[#allocation6 + $0xc0] sm:$0xff] %v739_v41  ;;  %772 = vst [vmem:[#allocation6 + $0xc8] sm:$0xff] %v740_v48  ;;  %v711_v22 = vadd.f32 %v1209_v42, %v678_v44  ;;  %v712_v32 = vadd.f32 %v884_v45, %v678_v44 }
 0x32b   :  { %v743_v58 = vmul.f32 %v711_v22, %v1291_v4  ;;  %v744_v33 = vmul.f32 %v712_v32, %v1285_v47 }
 0x32d   :  { %775 = vst [vmem:[#allocation6 + $0xe0] sm:$0xff] %v743_v58  ;;  %776 = vst [vmem:[#allocation6 + $0xe8] sm:$0xff] %v744_v33 }
 0x32e   :  { %918 = shalt.err (!%p915_p12)
}
 0x32f   :  { %s919_s15 = scalar_lea.hbm %s1267_s7, 4096 }
 0x330   :  { %p920_p13 = scmp.ne.s32.totalorder %s1267_s7, %s919_s15  ;;  %p923_p0 = scmp.lt.u32.totalorder %s919_s15, %s1267_s7 }
 0x332   :  { %p925_p1 = pnand %p923_p0, %p920_p13 }
 0x334   :  { %928 = shalt.err (!%p925_p1)
}
 0x335   :  { %790 = dma.vmem_to_hbm [thread:$0]  %s785_s6, 4096, %s1267_s7, [#allocation5], %s934_s11, %s934_s11, %s935_s12  }
 0x336   :  { %931 = dma.done.wait [#allocation5], 4096  }
 0x337   :  { %932 = vsyncadd [#allocation5], 4294963200 }
 0x338   :  { %794 = vsyncpa [#allocation4], 1 }
 0x339   :  { %795 = vsyncpa [#allocation5], 1 }

</bundles_post_ra>
